<compile_context>
chip_gen: v6e
topology: v6e:2x2x1
jax: 0.10.0
libtpu: 0.0.40
codegen_flags: <defaults>
</compile_context>

<pallas_src>
import functools

import jax
import jax.numpy as jnp
from jax.experimental import pallas as pl
from jax.experimental.pallas import tpu as pltpu


# ---------------------------------------------------------------------------
# Sizing helpers
# ---------------------------------------------------------------------------
def _vmem_capacity_bytes():
    """Physical VMEM per TensorCore; falls back to the v7x minimum (64 MiB)."""
    try:
        return int(pltpu.get_tpu_info().vmem_capacity_bytes)
    except Exception:
        return 64 * 1024 * 1024


def _choose_ff_chunk(total_ff, target=2048):
    """Width of one hidden (H*ff) chunk for the reduction grid axis."""
    if total_ff <= target:
        return total_ff, 1                       # single chunk == full dim
    n = -(-total_ff // target)
    ffc = -(-total_ff // n)
    ffc = ((ffc + 127) // 128) * 128             # lane multiple (dense DMA/MXU)
    n = -(-total_ff // ffc)
    return ffc, n


def _pick_token_tile(N, d_model, ffc, x_bytes, o_bytes, w_bytes, budget):
    """Largest token tile that fits the VMEM budget (double-buffering included)."""
    if N <= 8:
        return N
    # Fixed per-iteration cost: weight/bias chunks, double-buffered (they move
    # along the reduction axis, so double-buffering is what we want).
    fixed = 2 * (2 * d_model * ffc * w_bytes + ffc * 4 + d_model * 4)
    # Per-token-row cost: x tile + o tile (double-buffered), f32 accumulator
    # scratch, hidden f32 intermediate and its operand-dtype copy.
    per_row = (2 * d_model * x_bytes
               + 2 * d_model * o_bytes
               + d_model * 4
               + ffc * (4 + w_bytes))
    tn = max(8, (budget - fixed) // per_row)
    tn = min(tn, 1024, N)
    if tn >= N:
        tn = N
    elif tn >= 256:
        tn = (tn // 256) * 256                   # MXU/lane-friendly
    else:
        tn = max(8, (tn // 8) * 8)               # sublane multiple
    # Keep >= 2 token steps when cheap so the "parallel" axis can be sharded
    # across both v7x TensorCores.
    if tn >= N and N > 8:
        half = ((-(-N // 2)) + 7) // 8 * 8
        if half < N:
            tn = half
    return int(tn)


# ---------------------------------------------------------------------------
# Parameter preparation (cacheable by the caller when weights are static)
# ---------------------------------------------------------------------------
def prepare_blockdiag_params(w1, b1, w2, b2, operand_dtype, ff_chunk):
    """Fold per-head weights into block-diagonal W1 (d_model, H*ff) / W2 (H*ff, d_model).

    w1: (H, ff, hd), b1: (H, ff), w2: (H, hd, ff), b2: (H, hd).
    Hidden axis is zero-padded up to a multiple of ff_chunk (padding contributes
    exactly zero: relu(x @ 0 + 0) @ 0 == 0).
    """
    H, ff, hd = w1.shape
    d_model = H * hd
    F = H * ff
    n_chunks = -(-F // ff_chunk)
    Fp = n_chunks * ff_chunk

    ar = jnp.arange(H)
    w1_t = jnp.transpose(w1, (0, 2, 1)).astype(operand_dtype)   # (H, hd, ff)
    w2_t = jnp.transpose(w2, (0, 2, 1)).astype(operand_dtype)   # (H, ff, hd)
    w1_bd = (jnp.zeros((H, hd, H, ff), operand_dtype)
             .at[ar, :, ar, :].set(w1_t).reshape(d_model, F))
    w2_bd = (jnp.zeros((H, ff, H, hd), operand_dtype)
             .at[ar, :, ar, :].set(w2_t).reshape(F, d_model))
    b1_bd = b1.reshape(1, F).astype(jnp.float32)
    b2_bd = b2.reshape(1, d_model).astype(jnp.float32)
    if Fp != F:
        w1_bd = jnp.pad(w1_bd, ((0, 0), (0, Fp - F)))
        w2_bd = jnp.pad(w2_bd, ((0, Fp - F), (0, 0)))
        b1_bd = jnp.pad(b1_bd, ((0, 0), (0, Fp - F)))
    return w1_bd, b1_bd, w2_bd, b2_bd


def prepare_perhead_params(w1, b1, w2, b2, operand_dtype):
    """Per-head dense weights for the MXU-sized-head path."""
    w1_t = jnp.transpose(w1, (0, 2, 1)).astype(operand_dtype)   # (H, hd, ff)
    w2_t = jnp.transpose(w2, (0, 2, 1)).astype(operand_dtype)   # (H, ff, hd)
    b1_r = b1[:, None, :].astype(jnp.float32)                   # (H, 1, ff)
    b2_r = b2[:, None, :].astype(jnp.float32)                   # (H, 1, hd)
    return w1_t, b1_r, w2_t, b2_r


# ---------------------------------------------------------------------------
# Kernels
# ---------------------------------------------------------------------------
def _mhff_blockdiag_kernel(x_ref, w1_ref, b1_ref, w2_ref, b2_ref, o_ref, acc_ref):
    """Block-diagonal fused FFN, ff-chunked reduction over grid axis 1.

    x_ref : (TN, d_model)    token tile (fed in the operand dtype)
    w1_ref: (d_model, FFC)   block-diagonal conv1 weight chunk
    b1_ref: (1, FFC)         conv1 bias chunk (f32)
    w2_ref: (FFC, d_model)   block-diagonal conv2 weight chunk
    b2_ref: (1, d_model)     conv2 bias (f32)
    o_ref : (TN, d_model)
    acc_ref: (TN, d_model)   f32 VMEM accumulator (scratch)
    """
    k = pl.program_id(1)

    @pl.when(k == 0)
    def _():
        acc_ref[...] = jnp.zeros_like(acc_ref)

    cdt = w1_ref.dtype
    x = x_ref[...]
    if x.dtype != cdt:                      # no-op when activations are pre-cast
        x = x.astype(cdt)

    # expand chunk: (TN, d_model) @ (d_model, FFC) -> f32 accumulate on the MXU
    h = jnp.dot(x, w1_ref[...], preferred_element_type=jnp.float32)
    h = jnp.maximum(h + b1_ref[...], 0.0)   # bias + ReLU in f32 (VPU)

    # contract chunk: (TN, FFC) @ (FFC, d_model) -> accumulate across chunks
    acc_ref[...] += jnp.dot(h.astype(cdt), w2_ref[...],
                            preferred_element_type=jnp.float32)

    @pl.when(k == pl.num_programs(1) - 1)
    def _():
        o_ref[...] = (acc_ref[...] + b2_ref[...]).astype(o_ref.dtype)


def _mhff_perhead_kernel(x_ref, w1_ref, b1_ref, w2_ref, b2_ref, o_ref):
    """Dense per-head FFN (used when head_dim is MXU-sized, i.e. % 128 == 0).

    x_ref : (TT, hd)   token tile for one (batch, head)
    w1_ref: (hd, ff)   b1_ref: (1, ff)   w2_ref: (ff, hd)   b2_ref: (1, hd)
    o_ref : (TT, hd)   written directly at the permuted (b, h, t) location
    """
    cdt = w1_ref.dtype
    x = x_ref[...]
    if x.dtype != cdt:
        x = x.astype(cdt)
    h = jnp.dot(x, w1_ref[...], preferred_element_type=jnp.float32)
    h = jnp.maximum(h + b1_ref[...], 0.0)
    y = jnp.dot(h.astype(cdt), w2_ref[...], preferred_element_type=jnp.float32)
    o_ref[...] = (y + b2_ref[...]).astype(o_ref.dtype)


# ---------------------------------------------------------------------------
# Forward wrappers
# ---------------------------------------------------------------------------
@functools.partial(jax.jit, static_argnames=("n_heads", "ff_chunk", "out_dtype"))
def _mhff_blockdiag_forward(x, w1_bd, b1_bd, w2_bd, b2_bd, *,
                            n_heads, ff_chunk, out_dtype):
    bs, T, d_model = x.shape
    H = n_heads
    hd = d_model // H
    N = bs * T
    Fp = w1_bd.shape[1]
    n_chunks = Fp // ff_chunk

    x_bytes = jnp.dtype(x.dtype).itemsize
    o_bytes = jnp.dtype(out_dtype).itemsize
    w_bytes = jnp.dtype(w1_bd.dtype).itemsize

    vmem_cap = _vmem_capacity_bytes()
    budget = max(8 << 20, int(vmem_cap * 0.45))
    TN = _pick_token_tile(N, d_model, ff_chunk, x_bytes, o_bytes, w_bytes, budget)

    footprint = (2 * TN * d_model * (x_bytes + o_bytes)
                 + TN * d_model * 4
                 + TN * ff_chunk * (4 + w_bytes)
                 + 2 * (2 * d_model * ff_chunk * w_bytes + ff_chunk * 4 + d_model * 4))
    vmem_limit = int(min(vmem_cap, max(32 << 20, 2 * footprint)))

    x_flat = x.reshape(N, d_model)          # contiguous token-major, no transpose
    grid = (pl.cdiv(N, TN), n_chunks)

    cost = pl.CostEstimate(
        flops=4 * N * d_model * Fp,
        transcendentals=0,
        bytes_accessed=(N * d_model * (x_bytes + o_bytes)
                        + 2 * d_model * Fp * w_bytes + (Fp + d_model) * 4))

    y = pl.pallas_call(
        _mhff_blockdiag_kernel,
        out_shape=jax.ShapeDtypeStruct((N, d_model), out_dtype),
        grid_spec=pltpu.PrefetchScalarGridSpec(
            num_scalar_prefetch=0,
            grid=grid,
            in_specs=[
                pl.BlockSpec((TN, d_model), lambda i, k: (i, 0)),       # tokens
                pl.BlockSpec((d_model, ff_chunk), lambda i, k: (0, k)),  # W1 chunk
                pl.BlockSpec((1, ff_chunk), lambda i, k: (0, k)),        # b1 chunk
                pl.BlockSpec((ff_chunk, d_model), lambda i, k: (k, 0)),  # W2 chunk
                pl.BlockSpec((1, d_model), lambda i, k: (0, 0)),         # b2
            ],
            out_specs=pl.BlockSpec((TN, d_model), lambda i, k: (i, 0)),
            scratch_shapes=[pltpu.VMEM((TN, d_model), jnp.float32)],
        ),
        compiler_params=pltpu.CompilerParams(
            dimension_semantics=("parallel", "arbitrary"),
            vmem_limit_bytes=vmem_limit),
        cost_estimate=cost,
    )(x_flat, w1_bd, b1_bd, w2_bd, b2_bd)

    # Reproduce torch.cat(outputs, dim=-2).reshape(bs, -1, d_model).
    # Kept in the wrapper: with hd < 128 pushing it into the kernel would make
    # the output lane-sparse (masked vst penalty).
    cat = jnp.transpose(y.reshape(bs, T, H, hd), (0, 2, 1, 3)).reshape(bs, H * T, hd)
    return cat.reshape(bs, -1, d_model)


@functools.partial(jax.jit, static_argnames=("n_heads", "token_tile", "out_dtype"))
def _mhff_perhead_forward(x, w1t, b1r, w2t, b2r, *,
                          n_heads, token_tile=512, out_dtype=jnp.float32):
    bs, T, d_model = x.shape
    H = n_heads
    hd = d_model // H
    ff = w1t.shape[-1]
    TT = T if T <= token_tile else (token_tile // 8) * 8

    x_bytes = jnp.dtype(x.dtype).itemsize
    o_bytes = jnp.dtype(out_dtype).itemsize
    w_bytes = jnp.dtype(w1t.dtype).itemsize
    vmem_cap = _vmem_capacity_bytes()
    footprint = (2 * TT * hd * (x_bytes + o_bytes) + TT * ff * (4 + w_bytes)
                 + 2 * (2 * hd * ff * w_bytes + (ff + hd) * 4))
    vmem_limit = int(min(vmem_cap, max(32 << 20, 2 * footprint)))

    grid = (bs, H, pl.cdiv(T, TT))           # per-head weights resident over t
    cost = pl.CostEstimate(
        flops=4 * bs * T * d_model * ff,
        transcendentals=0,
        bytes_accessed=(bs * T * d_model * (x_bytes + o_bytes)
                        + 2 * d_model * ff * w_bytes + H * (ff + hd) * 4))

    y = pl.pallas_call(
        _mhff_perhead_kernel,
        out_shape=jax.ShapeDtypeStruct((bs, H, T, hd), out_dtype),
        grid_spec=pltpu.PrefetchScalarGridSpec(
            num_scalar_prefetch=0,
            grid=grid,
            in_specs=[
                pl.BlockSpec((None, TT, hd), lambda b, h, t: (b, t, h)),   # x head slice
                pl.BlockSpec((None, hd, ff), lambda b, h, t: (h, 0, 0)),   # W1[h]
                pl.BlockSpec((None, 1, ff), lambda b, h, t: (h, 0, 0)),    # b1[h]
                pl.BlockSpec((None, ff, hd), lambda b, h, t: (h, 0, 0)),   # W2[h]
                pl.BlockSpec((None, 1, hd), lambda b, h, t: (h, 0, 0)),    # b2[h]
            ],
            # Write directly in the permuted torch.cat layout (b, h, t, d):
            # lane-dense since hd % 128 == 0, so no post-kernel HBM transpose.
            out_specs=pl.BlockSpec((None, None, TT, hd), lambda b, h, t: (b, h, t, 0)),
        ),
        compiler_params=pltpu.CompilerParams(
            dimension_semantics=("parallel", "parallel", "arbitrary"),
            vmem_limit_bytes=vmem_limit),
        cost_estimate=cost,
    )(x, w1t, b1r, w2t, b2r)

    # (bs, H, T, hd) already matches torch.cat(dim=-2); reshapes are layout-free.
    return y.reshape(bs, H * T, hd).reshape(bs, -1, d_model)


def multihead_feedforward(x, w1, b1, w2, b2, n_heads,
                          operand_dtype=jnp.bfloat16, out_dtype=None,
                          ff_chunk_target=2048):
    """x: (bs, T, d_model); w1: (H, ff, hd); b1: (H, ff); w2: (H, hd, ff); b2: (H, hd).

    Dispatches between the per-head dense path (head_dim % 128 == 0) and the
    block-diagonal fused path (small heads).  For static weights, prepare_* can
    be hoisted/cached by the caller; this convenience wrapper rebuilds them.
    """
    bs, T, d_model = x.shape
    hd = d_model // n_heads
    ff = w1.shape[1]
    if out_dtype is None:
        out_dtype = x.dtype

    # Feed activations in the (narrower) MXU operand dtype: halves x/o HBM
    # traffic in the mem-bound regime and removes the in-kernel cast temp.
    if jnp.dtype(operand_dtype).itemsize < jnp.dtype(x.dtype).itemsize:
        x_in = x.astype(operand_dtype)
    else:
        x_in = x

    if hd % 128 == 0:
        params = prepare_perhead_params(w1, b1, w2, b2, operand_dtype)
        return _mhff_perhead_forward(x_in, *params, n_heads=n_heads,
                                     out_dtype=out_dtype)

    ffc, _ = _choose_ff_chunk(n_heads * ff, ff_chunk_target)
    params = prepare_blockdiag_params(w1, b1, w2, b2, operand_dtype, ffc)
    return _mhff_blockdiag_forward(x_in, *params, n_heads=n_heads,
                                   ff_chunk=ffc, out_dtype=out_dtype)


# ---------------------------------------------------------------------------
# Reference & test
# ---------------------------------------------------------------------------
def reference_forward(x, w1, b1, w2, b2, n_heads):
    """Pure-JAX transcription of the PyTorch forward (eval mode), HIGHEST precision."""
    bs = x.shape[0]
    d_model = x.shape[-1]
    hd = d_model // n_heads
    prec = jax.lax.Precision.HIGHEST
    inp = x.reshape(bs, -1, n_heads, hd)
    outs = []
    for i in range(n_heads):
        xi = inp[:, :, i, :]                                            # (bs, T, hd)
        h = jnp.maximum(jnp.einsum("btd,fd->btf", xi, w1[i], precision=prec) + b1[i], 0.0)
        y = jnp.einsum("btf,df->btd", h, w2[i], precision=prec) + b2[i]
        outs.append(y)
    cat = jnp.concatenate(outs, axis=-2)
    return cat.reshape(bs, -1, d_model)


def _make_params(key, n_heads, ff_dim, hd):
    k1, k2, k3, k4 = jax.random.split(key, 4)
    s1 = 1.0 / jnp.sqrt(hd)
    s2 = 1.0 / jnp.sqrt(ff_dim)
    w1 = jax.random.uniform(k1, (n_heads, ff_dim, hd), jnp.float32, -s1, s1)
    b1 = jax.random.uniform(k2, (n_heads, ff_dim), jnp.float32, -s1, s1)
    w2 = jax.random.uniform(k3, (n_heads, hd, ff_dim), jnp.float32, -s2, s2)
    b2 = jax.random.uniform(k4, (n_heads, hd), jnp.float32, -s2, s2)
    return w1, b1, w2, b2


if __name__ == "__main__":
    key = jax.random.PRNGKey(0)
    kx1, kp1, kx2, kp2 = jax.random.split(key, 4)

    # ---- Config A: small heads -> block-diagonal fused path. ----
    bs, T = 2, 8
    d_model, n_heads, ff_dim = 32, 4, 32
    hd = d_model // n_heads
    x = jax.random.normal(kx1, (bs, T, d_model), dtype=jnp.float32)
    w1, b1, w2, b2 = _make_params(kp1, n_heads, ff_dim, hd)
    ref = reference_forward(x, w1, b1, w2, b2, n_heads)

    # f32 MXU operands (tolerance accounts for TPU matmul precision modes).
    out_f32 = jax.block_until_ready(
        multihead_feedforward(x, w1, b1, w2, b2, n_heads, operand_dtype=jnp.float32))
    assert out_f32.shape == (bs, T, d_model), out_f32.shape
    assert jnp.allclose(out_f32, ref, atol=2e-2, rtol=2e-2), float(
        jnp.max(jnp.abs(out_f32 - ref)))

    # Performance path: bf16 activations + bf16 weights, f32 accumulate.
    out_bf16 = jax.block_until_ready(
        multihead_feedforward(x, w1, b1, w2, b2, n_heads, operand_dtype=jnp.bfloat16))
    assert out_bf16.shape == (bs, T, d_model), out_bf16.shape
    assert jnp.allclose(out_bf16, ref, atol=1e-1, rtol=1e-1), float(
        jnp.max(jnp.abs(out_bf16 - ref)))

    # ---- Config B: MXU-sized heads (hd = 128) -> per-head dense path. ----
    bs2, T2 = 2, 8
    d_model2, n_heads2, ff_dim2 = 256, 2, 128
    hd2 = d_model2 // n_heads2
    x2 = jax.random.normal(kx2, (bs2, T2, d_model2), dtype=jnp.float32)
    w1_2, b1_2, w2_2, b2_2 = _make_params(kp2, n_heads2, ff_dim2, hd2)
    ref2 = reference_forward(x2, w1_2, b1_2, w2_2, b2_2, n_heads2)

    out2 = jax.block_until_ready(
        multihead_feedforward(x2, w1_2, b1_2, w2_2, b2_2, n_heads2,
                              operand_dtype=jnp.float32))
    assert out2.shape == (bs2, T2, d_model2), out2.shape
    assert jnp.allclose(out2, ref2, atol=2e-2, rtol=2e-2), float(
        jnp.max(jnp.abs(out2 - ref2)))

    print("KERNEL_OK")
</pallas_src>

<mosaic_0001>
module attributes {stable_mosaic.version = 11 : i64} {
  func.func @_mhff_blockdiag_kernel(%arg0: i32, %arg1: i32, %arg2: memref<8x32xf32, #tpu.memory_space<vmem>>, %arg3: memref<32x128xf32, #tpu.memory_space<vmem>>, %arg4: memref<1x128xf32, #tpu.memory_space<vmem>>, %arg5: memref<128x32xf32, #tpu.memory_space<vmem>>, %arg6: memref<1x32xf32, #tpu.memory_space<vmem>>, %arg7: memref<8x32xf32, #tpu.memory_space<vmem>>, %arg8: memref<8x32xf32, #tpu.memory_space<vmem>>) attributes {dimension_semantics = [#tpu.dimension_semantics<parallel>, #tpu.dimension_semantics<arbitrary>], iteration_bounds = array<i64: 2, 1>, scalar_prefetch = 0 : i64, scratch_operands = 1 : i64, tpu.core_type = #tpu.core_type<tc>, window_params = [{transform_indices = @transform_0, window_bounds = array<i64: 8, 32>}, {transform_indices = @transform_1, window_bounds = array<i64: 32, 128>}, {transform_indices = @transform_2, window_bounds = array<i64: 1, 128>}, {transform_indices = @transform_3, window_bounds = array<i64: 128, 32>}, {pipeline_mode = #tpu.pipeline_mode<synchronous>, transform_indices = @transform_4, window_bounds = array<i64: 1, 32>}, {transform_indices = @transform_5, window_bounds = array<i64: 8, 32>}]} {
    %c0_i32 = arith.constant 0 : i32
    %0 = arith.cmpi eq, %arg1, %c0_i32 : i32
    %1 = arith.extui %0 : i1 to i32
    %c0_i32_0 = arith.constant 0 : i32
    %2 = arith.cmpi ne, %1, %c0_i32_0 : i32
    scf.if %2 {
      %cst_16 = arith.constant 0.000000e+00 : f32
      %19 = vector.broadcast %cst_16 : f32 to vector<8x32xf32>
      %c0_17 = arith.constant 0 : index
      %c0_18 = arith.constant 0 : index
      %20 = vector.load %arg8[%c0_17, %c0_18] : memref<8x32xf32, #tpu.memory_space<vmem>>, vector<8x32xf32>
      tpu.vector_store %arg8[%c0_17, %c0_18], %19 {strides = array<i32>} : memref<8x32xf32, #tpu.memory_space<vmem>>, vector<8x32xf32>,
    } else {
    }
    %c0 = arith.constant 0 : index
    %c0_1 = arith.constant 0 : index
    %3 = vector.load %arg2[%c0, %c0_1] : memref<8x32xf32, #tpu.memory_space<vmem>>, vector<8x32xf32>
    %c0_2 = arith.constant 0 : index
    %c0_3 = arith.constant 0 : index
    %4 = vector.load %arg3[%c0_2, %c0_3] : memref<32x128xf32, #tpu.memory_space<vmem>>, vector<32x128xf32>
    %cst = arith.constant dense<0.000000e+00> : vector<8x128xf32>
    %5 = tpu.matmul %3, %4, %cst {dimension_numbers = #tpu.dot_dimension_numbers<[1], [0], [0], [1], [0, 0, 1, 1], [], []>} : vector<8x32xf32>, vector<32x128xf32>, vector<8x128xf32> -> vector<8x128xf32>
    %c0_4 = arith.constant 0 : index
    %c0_5 = arith.constant 0 : index
    %6 = vector.load %arg4[%c0_4, %c0_5] : memref<1x128xf32, #tpu.memory_space<vmem>>, vector<1x128xf32>
    %7 = vector.broadcast %6 : vector<1x128xf32> to vector<8x128xf32>
    %8 = arith.addf %5, %7 : vector<8x128xf32>
    %cst_6 = arith.constant 0.000000e+00 : f32
    %9 = vector.broadcast %cst_6 : f32 to vector<8x128xf32>
    %10 = arith.maximumf %8, %9 : vector<8x128xf32>
    %c0_7 = arith.constant 0 : index
    %c0_8 = arith.constant 0 : index
    %11 = vector.load %arg8[%c0_7, %c0_8] : memref<8x32xf32, #tpu.memory_space<vmem>>, vector<8x32xf32>
    %c0_9 = arith.constant 0 : index
    %c0_10 = arith.constant 0 : index
    %12 = vector.load %arg5[%c0_9, %c0_10] : memref<128x32xf32, #tpu.memory_space<vmem>>, vector<128x32xf32>
    %cst_11 = arith.constant dense<0.000000e+00> : vector<8x32xf32>
    %13 = tpu.matmul %10, %12, %cst_11 {dimension_numbers = #tpu.dot_dimension_numbers<[1], [0], [0], [1], [0, 0, 1, 1], [], []>} : vector<8x128xf32>, vector<128x32xf32>, vector<8x32xf32> -> vector<8x32xf32>
    %14 = arith.addf %11, %13 : vector<8x32xf32>
    %c0_12 = arith.constant 0 : index
    %c0_13 = arith.constant 0 : index
    %15 = vector.load %arg8[%c0_12, %c0_13] : memref<8x32xf32, #tpu.memory_space<vmem>>, vector<8x32xf32>
    tpu.vector_store %arg8[%c0_12, %c0_13], %14 {strides = array<i32>} : memref<8x32xf32, #tpu.memory_space<vmem>>, vector<8x32xf32>,
    %c0_i32_14 = arith.constant 0 : i32
    %16 = arith.cmpi eq, %arg1, %c0_i32_14 : i32
    %17 = arith.extui %16 : i1 to i32
    %c0_i32_15 = arith.constant 0 : i32
    %18 = arith.cmpi ne, %17, %c0_i32_15 : i32
    scf.if %18 {
      %c0_16 = arith.constant 0 : index
      %c0_17 = arith.constant 0 : index
      %19 = vector.load %arg8[%c0_16, %c0_17] : memref<8x32xf32, #tpu.memory_space<vmem>>, vector<8x32xf32>
      %c0_18 = arith.constant 0 : index
      %c0_19 = arith.constant 0 : index
      %20 = vector.load %arg6[%c0_18, %c0_19] : memref<1x32xf32, #tpu.memory_space<vmem>>, vector<1x32xf32>
      %21 = vector.broadcast %20 : vector<1x32xf32> to vector<8x32xf32>
      %22 = arith.addf %19, %21 : vector<8x32xf32>
      %c0_20 = arith.constant 0 : index
      %c0_21 = arith.constant 0 : index
      %23 = vector.load %arg7[%c0_20, %c0_21] : memref<8x32xf32, #tpu.memory_space<vmem>>, vector<8x32xf32>
      tpu.vector_store %arg7[%c0_20, %c0_21], %22 {strides = array<i32>} : memref<8x32xf32, #tpu.memory_space<vmem>>, vector<8x32xf32>,
    } else {
    }
    return
  }
  func.func @transform_0(%arg0: i32, %arg1: i32) -> (i32, i32) {
    %c0_i32 = arith.constant 0 : i32
    %c0_i32_0 = arith.constant 0 : i32
    return %arg0, %c0_i32 : i32, i32
  }
  func.func @transform_1(%arg0: i32, %arg1: i32) -> (i32, i32) {
    %c0_i32 = arith.constant 0 : i32
    %c0_i32_0 = arith.constant 0 : i32
    return %c0_i32, %arg1 : i32, i32
  }
  func.func @transform_2(%arg0: i32, %arg1: i32) -> (i32, i32) {
    %c0_i32 = arith.constant 0 : i32
    %c0_i32_0 = arith.constant 0 : i32
    return %c0_i32, %arg1 : i32, i32
  }
  func.func @transform_3(%arg0: i32, %arg1: i32) -> (i32, i32) {
    %c0_i32 = arith.constant 0 : i32
    %c0_i32_0 = arith.constant 0 : i32
    return %arg1, %c0_i32 : i32, i32
  }
  func.func @transform_4(%arg0: i32, %arg1: i32) -> (i32, i32) {
    %c0_i32 = arith.constant 0 : i32
    %c0_i32_0 = arith.constant 0 : i32
    %c0_i32_1 = arith.constant 0 : i32
    return %c0_i32, %c0_i32_0 : i32, i32
  }
  func.func @transform_5(%arg0: i32, %arg1: i32) -> (i32, i32) {
    %c0_i32 = arith.constant 0 : i32
    %c0_i32_0 = arith.constant 0 : i32
    return %arg0, %c0_i32 : i32, i32
  }
}

</mosaic_0001>

<bundles_post_ra>
// kernel: _mhff_blockdiag_forward.1
= control target key start
LH: loop header
LB: loop body
LE: loop exit
PB: predicated region body
PF: predicated region fallthrough
CT: control target
= control target key end

     0   :  { %s749_s18 = smov 0   ;;  %s751_s19 = smov 0   ;;  %s884_s0 = inlined_call_operand.vmem [shape: f32[16,32], index: 0, kind: input, shape index: {}]   ;;  %s885_s1 = inlined_call_operand.vmem [shape: f32[32,128], index: 1, kind: input, shape index: {}]   ;;  %s886_s2 = inlined_call_operand.vmem [shape: f32[1,128], index: 2, kind: input, shape index: {}]   ;;  %s887_s3 = inlined_call_operand.vmem [shape: f32[128,32], index: 3, kind: input, shape index: {}]   ;;  %s888_s4 = inlined_call_operand.vmem [shape: f32[1,32], index: 4, kind: input, shape index: {}]   ;;  %s889_s5 = inlined_call_operand.vmem [shape: f32[16,32], index: 5, kind: output, shape index: {}]  }
   0x1   :  { %s753_s20 = smov 0  }
   0x2 LB: > { %s27_s21 = sadd.s32 1, %s711_s19  ;;  %p591_p0 = scmp.ge.s32.totalorder %s715_s20, 1  ;;  %s715_s20 = sphi %s753_s20, %s15_s20   ;;  %s711_s19 = sphi %s751_s19, %s891_s19   ;;  %s707_s18 = sphi %s749_s18, %s890_s18  }
   0x3   : > { %p29_p1 = scmp.ge.s32.totalorder %s27_s21, 2  ;;  %p226_p2 = scmp.lt.s32.totalorder %s715_s20, 3 }
   0x5   : > { %s893_s21 = smov (%p29_p1, %s27_s21), 0  ;;  %p227_p3 = pnand %p591_p0, %p226_p2 }
   0x6   : > { %p264_p4 = scmp.lt.s32.totalorder (!%p227_p3), %s707_s18, 1 }
   0x7   : > { %230 = sbr.rel (%p227_p3) target bundleno = 424 (0x1a8), region = 40 }
   0xc   : > { %v295_v0 = vld [vmem:[%s885_s1 + $0x18] sm:$0xff]  ;;  %v717_v1 = vmov 0.0   ;;  %v294_v2 = vld [vmem:[%s885_s1 + $0x10] sm:$0xff]  ;;  %vm718_vm0 = vmmov 0   ;;  %vm289_vm1 = vcmask 261120   ;;  %s895_s18 = smov (!%p264_p4, %s707_s18), 1 }
   0xd   : > { %621 = vmatprep.subr.mxu0 %v717_v1  ;;  %629 = vmatprep.mubr.msk.f32.mxu0 %vm718_vm0, %v717_v1  ;;  %v394_v3 = vld [vmem:[%s887_s3 + $0x78] sm:$0xff]  ;;  %290 = vst.msk [vmem:[#allocation2] sm:$0xff] %vm289_vm1, %v717_v1  ;;  %v393_v4 = vld [vmem:[%s887_s3 + $0x70] sm:$0xff]  ;;  %v293_v5 = vld [vmem:[%s885_s1 + $0x8] sm:$0xff]  ;;  %s592_s7 = sshll.u32 %s895_s18, 3 }
   0xe   : > { %622 = vmatpush3.msra.mxu0 %v295_v0  ;;  %632 = vmatprep.subr.mxu1 %v717_v1  ;;  %v392_v6 = vld [vmem:[%s887_s3 + $0x68] sm:$0xff]  ;;  %v292_v7 = vld [vmem:[%s885_s1] sm:$0xff]  ;;  %s267_s14 = scalar_lea.vmem %s884_s0, %s592_s7  ;;  %v390_v10 = vld [vmem:[%s887_s3 + $0x58] sm:$0xff]  ;;  %s284_s6 = scalar_lea.vmem %s889_s5, %s592_s7 }
   0xf   : > { %623 = vmatprep.subr.mxu0 %v717_v1  ;;  %633 = vmatpush3.msra.mxu1 %v394_v3  ;;  %v291_v8 = vld [vmem:[%s267_s14] sm:$0xff]  ;;  %v389_v11 = vld [vmem:[%s887_s3 + $0x50] sm:$0xff]  ;;  %v388_v12 = vld [vmem:[%s887_s3 + $0x48] sm:$0xff] }
  0x10   : > { %624 = vmatpush3.msra.mxu0 %v294_v2  ;;  %634 = vmatprep.subr.mxu1 %v717_v1  ;;  %v391_v9 = vld [vmem:[%s887_s3 + $0x60] sm:$0xff]  ;;  %v386_v14 = vld [vmem:[%s887_s3 + $0x38] sm:$0xff]  ;;  %v385_v15 = vld [vmem:[%s887_s3 + $0x30] sm:$0xff] }
  0x11   : > { %625 = vmatprep.subr.mxu0 %v717_v1  ;;  %635 = vmatpush3.msra.mxu1 %v393_v4  ;;  %v387_v13 = vld [vmem:[%s887_s3 + $0x40] sm:$0xff]  ;;  %v384_v16 = vld [vmem:[%s887_s3 + $0x28] sm:$0xff]  ;;  %v382_v18 = vld [vmem:[%s887_s3 + $0x18] sm:$0xff] }
  0x12   : > { %626 = vmatpush3.msra.mxu0 %v293_v5  ;;  %636 = vmatprep.subr.mxu1 %v717_v1  ;;  %v383_v17 = vld [vmem:[%s887_s3 + $0x20] sm:$0xff]  ;;  %v381_v19 = vld [vmem:[%s887_s3 + $0x10] sm:$0xff]  ;;  %v380_v20 = vld [vmem:[%s887_s3 + $0x8] sm:$0xff] }
  0x13   : > { %627 = vmatprep.subr.mxu0 %v717_v1  ;;  %637 = vmatpush3.msra.mxu1 %v392_v6  ;;  %v379_v21 = vld [vmem:[%s887_s3] sm:$0xff] }
  0x14   : > { %628 = vmatpush3.msra.mxu0 %v292_v7  ;;  %638 = vmatprep.subr.mxu1 %v717_v1  ;;  %v594_v22 = vld [vmem:[%s886_s2] ss:$0 sm:$0xff] }
  0x15   : > { %630 = vmatmul.mubr.msk.f32.vlgmr.msra.gmra.mxu0 %vm289_vm1, %v291_v8  ;;  %639 = vmatpush3.msra.mxu1 %v391_v9  ;;  %v378_v27 = vld [vmem:[#allocation2] sm:$0xff] }
  0x16   : > { %640 = vmatprep.subr.mxu1 %v717_v1  ;;  %664 = vmatprep.mubr.msk.f32.mxu1 %vm718_vm0, %v717_v1  ;;  %v596_v31 = vld [vmem:[%s888_s4] ss:$0 sm:$0xff] }
  0x17   : > { %641 = vmatpush3.msra.mxu1 %v390_v10 }
  0x18   : > { %642 = vmatprep.subr.mxu1 %v717_v1 }
  0x19   : > { %643 = vmatpush3.msra.mxu1 %v389_v11 }
  0x1a   : > { %644 = vmatprep.subr.mxu1 %v717_v1 }
  0x1b   : > { %645 = vmatpush3.msra.mxu1 %v388_v12 }
  0x1c   : > { %646 = vmatprep.subr.mxu1 %v717_v1 }
  0x1d   : > { %647 = vmatpush3.msra.mxu1 %v387_v13 }
  0x1e   : > { %648 = vmatprep.subr.mxu1 %v717_v1 }
  0x1f   : > { %649 = vmatpush3.msra.mxu1 %v386_v14 }
  0x20   : > { %650 = vmatprep.subr.mxu1 %v717_v1 }
  0x21   : > { %651 = vmatpush3.msra.mxu1 %v385_v15 }
  0x22   : > { %652 = vmatprep.subr.mxu1 %v717_v1 }
  0x23   : > { %653 = vmatpush3.msra.mxu1 %v384_v16 }
  0x24   : > { %654 = vmatprep.subr.mxu1 %v717_v1 }
  0x25   : > { %655 = vmatpush3.msra.mxu1 %v383_v17 }
  0x26   : > { %656 = vmatprep.subr.mxu1 %v717_v1 }
  0x27   : > { %657 = vmatpush3.msra.mxu1 %v382_v18 }
  0x28   : > { %658 = vmatprep.subr.mxu1 %v717_v1 }
  0x29   : > { %659 = vmatpush3.msra.mxu1 %v381_v19 }
  0x2a   : > { %660 = vmatprep.subr.mxu1 %v717_v1 }
  0x2b   : > { %661 = vmatpush3.msra.mxu1 %v380_v20 }
  0x2c   : > { %662 = vmatprep.subr.mxu1 %v717_v1 }
  0x2d   : > { %663 = vmatpush3.msra.mxu1 %v379_v21 }
  0xd5   : > { %v373_v23 = vpop.f32.mrf.mxu0 }
  0xd6   : > { %v374_v24 = vadd.f32 %v594_v22, %v373_v23 }
  0xd7   : > { %v631_v25 = vpop.f32.mrf.mxu0 }
  0xd8   : > { %v377_v26 = vmax.f32 %v374_v24, 0.0 }
  0xda   : > { %665 = vmatmul.mubr.f32.vlgmr.msra.gmra.mxu1 %v377_v26 }
 0x19a   : > { %v461_v28 = vpop.f32.mrf.mxu1 }
 0x19b   : > { %v465_v29 = vadd.f32 %v461_v28, %v378_v27 }
 0x19c   : > { %v666_v30 = vpop.f32.mrf.mxu1 }
 0x19d   : > { %466 = vst.msk [vmem:[#allocation2] sm:$0xff] %vm289_vm1, %v465_v29 }
 0x1a4   : > { %v470_v32 = vld [vmem:[#allocation2] sm:$0xff] }
 0x1a5   : > { %v478_v33 = vadd.f32 %v596_v31, %v470_v32 }
 0x1a7   : > { %479 = vst.msk [vmem:[%s284_s6] sm:$0xff] %vm289_vm1, %v478_v33 }
 0x1a8 PF: > { %s15_s20 = sadd.s32 1, %s715_s20   ;;  %s890_s18 = smov %s711_s19 }
 0x1a9   : > { %p12_p5 = scmp.ge.s32.totalorder %s15_s20, 4   ;;  %s891_s19 = smov %s893_s21 }
 0x1ab   :  { %14 = sbr.rel (!%p12_p5) target bundleno = 2 (0x2), region = 87 }

</bundles_post_ra>
